<compile_context>
chip_gen: v6e
topology: v6e:2x2x1
jax: 0.10.0
libtpu: 0.0.40
codegen_flags: <defaults>
</compile_context>

<pallas_src>
import functools

import jax
import jax.numpy as jnp
from jax.experimental import pallas as pl
from jax.experimental.pallas import tpu as pltpu


def _round_up(x, m):
    return (x + m - 1) // m * m


def _padded_bytes(rows, cols, itemsize):
    """VMEM footprint of a 2-D buffer after (sublane, 128-lane) tiling/padding."""
    sub = {4: 8, 2: 16, 1: 32}[itemsize]
    return _round_up(max(rows, 1), sub) * _round_up(max(cols, 1), 128) * itemsize


@functools.lru_cache(maxsize=None)
def _tpu_vmem_capacity():
    """Per-core VMEM capacity in bytes (falls back to 128 MiB if unknown)."""
    try:
        return int(pltpu.get_tpu_info().vmem_capacity_bytes)
    except Exception:
        return 128 << 20


def _gnn_critic_kernel(
    adj_ref,       # [TM, N]   normalized adjacency rows (compute dtype)
    xw_ref,        # [N,  C]   resident X @ Wg^T          (compute dtype)
    srow_ref,      # [TM, C]   this tile's node features, f32 (residual)
    act_ref,       # [TM, 1]   action column, f32
    seg_ref,       # [BT, TM]  0/1 segment-sum matrix     (compute dtype)
    bg_ref,        # [1,  C]   GCN bias, f32
    w1a_ref,       # [C,  HP]  lin1 rows for node feats   (compute dtype)
    w1b_ref,       # [1,  HP]  lin1 row for action scalar, f32
    b1_ref,        # [1,  HP]  f32
    w2_ref,        # [HP, HP]  (compute dtype)
    b2_ref,        # [1,  HP]  f32
    pooled_ref,    # [BT, HP]  f32 output (per-batch readout), BT = TM // act_dim
):
    cdt = adj_ref.dtype

    # GCN propagate; the transform (state @ Wg^T) was hoisted to the wrapper.
    conv = jnp.dot(adj_ref[...], xw_ref[...], preferred_element_type=jnp.float32)
    h = jnp.maximum(conv + bg_ref[...], 0.0) + srow_ref[...]          # [TM, C] f32

    # lin1 over concat([h, action]) == h @ W1[:C] + action * W1[C] + b1
    h1 = jnp.dot(h.astype(cdt), w1a_ref[...], preferred_element_type=jnp.float32)
    h1 = jnp.maximum(h1 + act_ref[...] * w1b_ref[...] + b1_ref[...], 0.0)  # [TM, HP]

    h2 = jnp.dot(h1.astype(cdt), w2_ref[...], preferred_element_type=jnp.float32)
    h2 = jnp.maximum(h2 + b2_ref[...], 0.0)                               # [TM, HP]

    # Per-batch readout: 0/1 segment matrix built once in the wrapper.
    pooled_ref[...] = jnp.dot(seg_ref[...], h2.astype(cdt),
                              preferred_element_type=jnp.float32)


def gcn_norm_adjacency(edge_index, num_nodes):
    """Dense symmetrically-normalized adjacency with self loops (PyG gcn_norm).

    Static per graph: build once outside the per-call jitted forward."""
    src = edge_index[0]
    dst = edge_index[1]
    a = jnp.zeros((num_nodes, num_nodes), jnp.float32).at[dst, src].add(1.0)
    a = a + jnp.eye(num_nodes, dtype=jnp.float32)
    deg = jnp.sum(a, axis=1)
    dinv = jnp.where(deg > 0, 1.0 / jnp.sqrt(deg), 0.0)
    return dinv[:, None] * a * dinv[None, :]


def prepare_params(params, dtype=jnp.bfloat16):
    """Hoist transposes / casts / lane padding out of the forward.

    Hidden dim is zero-padded to a multiple of 128 so every H-wide buffer in
    the kernel is lane-dense; the extra lanes carry exact zeros through both
    relus and the readout, and the wrapper slices them off before lin3."""
    c = params["wg"].shape[0]
    h = params["w1"].shape[0]
    hp = _round_up(h, 128)

    def padh(x):  # zero-pad last dim from h to hp
        return jnp.pad(x, [(0, 0)] * (x.ndim - 1) + [(0, hp - h)])

    w1 = params["w1"].T                                   # [C+1, H]
    return {
        # kept f32: used only for the hoisted X @ Wg^T in the wrapper
        "wg": params["wg"].T.astype(jnp.float32),          # [C, C]
        "bg": params["bg"].reshape(1, c).astype(jnp.float32),
        "w1a": padh(w1[:c, :]).astype(dtype),               # [C, HP]
        "w1b": padh(w1[c:, :].reshape(1, h)).astype(jnp.float32),  # [1, HP]
        "b1": padh(params["b1"].reshape(1, h)).astype(jnp.float32),
        "w2": jnp.pad(params["w2"].T,
                      ((0, hp - h), (0, hp - h))).astype(dtype),   # [HP, HP]
        "b2": padh(params["b2"].reshape(1, h)).astype(jnp.float32),
        "w3": params["w3"].T.astype(jnp.float32),            # [H, 1] (unpadded)
        "b3": params["b3"].reshape(1, 1).astype(jnp.float32),
    }


def _vmem_need_bytes(tm, bt, n, c, hp, adj_item):
    """Conservative VMEM footprint with padded shapes and double-buffering."""
    f32 = 4
    need = 0
    need += 2 * _padded_bytes(tm, n, adj_item)        # adjacency row tile
    need += 2 * _padded_bytes(tm, c, f32)              # residual state rows
    need += 2 * _padded_bytes(tm, 1, f32)              # action column
    need += 2 * _padded_bytes(bt, hp, f32)             # pooled output tile
    need += 2 * _padded_bytes(n, c, adj_item)          # resident XW table
    need += 2 * _padded_bytes(bt, tm, adj_item)        # segment matrix
    need += 2 * (_padded_bytes(c, hp, adj_item) + _padded_bytes(hp, hp, adj_item))
    need += 2 * (_padded_bytes(1, c, f32) + 4 * _padded_bytes(1, hp, f32))
    # f32 intermediates (conv/h, h1, h2) plus compute-dtype casts
    need += 2 * _padded_bytes(tm, c, f32) + 3 * _padded_bytes(tm, hp, f32)
    need += 2 * _padded_bytes(tm, hp, adj_item)
    return need


def _pick_row_tile(n, act_dim, c, hp, adj_item, budget_bytes, prefer_multi_step):
    """Rows per grid step: multiple of act_dim, divides N, (8,128)-legal
    (batch tile == B or multiple of 8), total padded VMEM within budget.
    Never falls back to a tile known to be wildly over budget: if nothing
    fits, the smallest legal tile is returned."""
    b = n // act_dim
    cands = []
    for d in sorted((d for d in range(1, b + 1) if b % d == 0), reverse=True):
        if d != b and d % 8 != 0:
            continue
        tm = d * act_dim
        cands.append((d, tm, _vmem_need_bytes(tm, d, n, c, hp, adj_item)))
    fitting = [x for x in cands if x[2] <= budget_bytes]
    if fitting:
        if prefer_multi_step:
            multi = [x for x in fitting if x[0] < b]
            if multi:
                return multi[0][1]   # largest >=2-step tile within budget
        return fitting[0][1]         # largest tile within budget
    return cands[-1][1]              # smallest legal tile (budget overrun)


@functools.partial(jax.jit, static_argnames=("act_dim",))
def gnn_critic_forward(prep, adj, state, action, *, act_dim):
    n, c = state.shape
    b = n // act_dim
    hp = prep["w2"].shape[0]        # lane-padded hidden width (multiple of 128)
    hdim = prep["w3"].shape[0]      # true hidden width
    cdt = adj.dtype
    adj_item = jnp.dtype(cdt).itemsize

    cap = _tpu_vmem_capacity()
    if cap <= (64 << 20):            # v7x-class core: leave Mosaic headroom,
        budget = 28 << 20            # prefer >=2 grid steps so both TCs work
        ceiling = 56 << 20
        prefer_multi = True
    else:                            # v5e / v6e: 128 MiB physical VMEM
        budget = 64 << 20
        ceiling = 100 << 20
        prefer_multi = False

    tm = _pick_row_tile(n, act_dim, c, hp, adj_item, budget, prefer_multi)
    bt = tm // act_dim
    grid = (n // tm,)

    # Hoisted GCN transform (associative with propagation): XW = state @ Wg^T.
    xw = jnp.dot(state.astype(jnp.float32), prep["wg"],
                 preferred_element_type=jnp.float32).astype(cdt)
    srow = state.astype(jnp.float32)
    act_col = action.reshape(n, 1).astype(jnp.float32)
    # 0/1 segment-sum matrix for this tile shape (same for every tile).
    seg = (jax.lax.broadcasted_iota(jnp.int32, (bt, tm), 1) // act_dim
           == jax.lax.broadcasted_iota(jnp.int32, (bt, tm), 0)).astype(cdt)

    def const_spec(shape):
        return pl.BlockSpec(shape, lambda i: (0,) * len(shape))

    in_specs = [
        pl.BlockSpec((tm, n), lambda i: (i, 0)),   # adjacency row tile
        const_spec((n, c)),                        # resident XW table
        pl.BlockSpec((tm, c), lambda i: (i, 0)),   # residual state rows
        pl.BlockSpec((tm, 1), lambda i: (i, 0)),   # action column rows
        const_spec((bt, tm)),                      # segment matrix
        const_spec((1, c)),                        # bg
        const_spec((c, hp)),                       # w1a
        const_spec((1, hp)),                       # w1b
        const_spec((1, hp)),                       # b1
        const_spec((hp, hp)),                      # w2
        const_spec((1, hp)),                       # b2
    ]
    out_spec = pl.BlockSpec((bt, hp), lambda i: (i, 0))

    vmem_need = _vmem_need_bytes(tm, bt, n, c, hp, adj_item)
    vmem_limit = int(max(32 << 20, min(vmem_need + (8 << 20), ceiling)))

    flops = int(2 * n * n * c + 2 * n * c * hp + 2 * n * hp * hp + 2 * n * hp)
    bytes_accessed = int(
        n * n * adj_item + n * c * (adj_item + 4) + n * 4
        + (bt * tm + c * hp + hp * hp) * adj_item
        + (4 * hp + c) * 4 + b * hp * 4)

    pooled = pl.pallas_call(
        _gnn_critic_kernel,
        out_shape=jax.ShapeDtypeStruct((b, hp), jnp.float32),
        grid=grid,
        in_specs=in_specs,
        out_specs=out_spec,
        compiler_params=pltpu.CompilerParams(
            dimension_semantics=("parallel",),
            vmem_limit_bytes=vmem_limit,
        ),
        cost_estimate=pl.CostEstimate(
            flops=flops, transcendentals=0, bytes_accessed=bytes_accessed),
    )(adj, xw, srow, act_col, seg,
      prep["bg"], prep["w1a"], prep["w1b"], prep["b1"], prep["w2"], prep["b2"])

    # lin3 in the wrapper on the unpadded lanes: keeps the kernel output
    # lane-dense ([B, HP]) and avoids an output-N=1 MXU pass inside the kernel.
    q = pooled[:, :hdim] @ prep["w3"] + prep["b3"]
    return q[:, 0]


def gnn_critic_reference(params, state, edge_index, action, *, act_dim):
    """Pure-JAX f32 reference mirroring the PyTorch forward."""
    n, c = state.shape
    adj = gcn_norm_adjacency(edge_index, n)
    conv = adj @ (state @ params["wg"].T) + params["bg"]
    x = jax.nn.relu(conv) + state
    x = x.reshape(-1, act_dim, c)
    cat = jnp.concatenate([x, action[..., None]], axis=-1)
    h = jax.nn.relu(cat @ params["w1"].T + params["b1"])
    h = jax.nn.relu(h @ params["w2"].T + params["b2"])
    h = jnp.sum(h, axis=1)
    return (h @ params["w3"].T + params["b3"])[:, 0]


def init_params(key, in_channels, hidden_size):
    ks = jax.random.split(key, 8)
    u = lambda k, shape, fan_in: jax.random.uniform(
        k, shape, jnp.float32, -1.0 / jnp.sqrt(fan_in), 1.0 / jnp.sqrt(fan_in)
    )
    return {
        "wg": u(ks[0], (in_channels, in_channels), in_channels),   # GCNConv lin [out,in]
        "bg": u(ks[1], (in_channels,), in_channels),
        "w1": u(ks[2], (hidden_size, in_channels + 1), in_channels + 1),
        "b1": u(ks[3], (hidden_size,), in_channels + 1),
        "w2": u(ks[4], (hidden_size, hidden_size), hidden_size),
        "b2": u(ks[5], (hidden_size,), hidden_size),
        "w3": u(ks[6], (1, hidden_size), hidden_size),
        "b3": u(ks[7], (1,), hidden_size),
    }


if __name__ == "__main__":
    in_channels = 4
    hidden_size = 32
    act_dim = 6
    batch = 2
    num_nodes = batch * act_dim  # 12

    key = jax.random.PRNGKey(0)
    k_par, k_state, k_act = jax.random.split(key, 3)

    params = init_params(k_par, in_channels, hidden_size)
    state = jax.random.normal(k_state, (num_nodes, in_channels), jnp.float32)
    action = jax.random.normal(k_act, (batch, act_dim), jnp.float32)

    # Deterministic bidirectional ring graph over the nodes.
    src = jnp.arange(num_nodes, dtype=jnp.int32)
    dst = (src + 1) % num_nodes
    edge_index = jnp.stack(
        [jnp.concatenate([src, dst]), jnp.concatenate([dst, src])], axis=0
    )

    q_ref = gnn_critic_reference(params, state, edge_index, action, act_dim=act_dim)

    # f32 compute path: strict numerical check against the reference.
    prep32 = prepare_params(params, dtype=jnp.float32)
    adj32 = gcn_norm_adjacency(edge_index, num_nodes).astype(jnp.float32)
    q32 = gnn_critic_forward(prep32, adj32, state, action, act_dim=act_dim)
    jax.block_until_ready(q32)
    assert q32.shape == (batch,)
    assert jnp.allclose(q32, q_ref, atol=1e-4, rtol=1e-4), (q32, q_ref)

    # bf16 compute path (default fast path): loose sanity check vs f32 reference.
    prep16 = prepare_params(params, dtype=jnp.bfloat16)
    adj16 = gcn_norm_adjacency(edge_index, num_nodes).astype(jnp.bfloat16)
    q16 = gnn_critic_forward(prep16, adj16, state, action, act_dim=act_dim)
    jax.block_until_ready(q16)
    assert q16.shape == (batch,)
    assert jnp.allclose(q16, q_ref, atol=5e-1, rtol=1e-1), (q16, q_ref)

    print("KERNEL_OK")
</pallas_src>

<mosaic_0001>
module attributes {stable_mosaic.version = 11 : i64} {
  func.func @_gnn_critic_kernel(%arg0: i32, %arg1: memref<12x12xf32, #tpu.memory_space<vmem>>, %arg2: memref<12x4xf32, #tpu.memory_space<vmem>>, %arg3: memref<12x4xf32, #tpu.memory_space<vmem>>, %arg4: memref<12x1xf32, #tpu.memory_space<vmem>>, %arg5: memref<2x12xf32, #tpu.memory_space<vmem>>, %arg6: memref<1x4xf32, #tpu.memory_space<vmem>>, %arg7: memref<4x128xf32, #tpu.memory_space<vmem>>, %arg8: memref<1x128xf32, #tpu.memory_space<vmem>>, %arg9: memref<1x128xf32, #tpu.memory_space<vmem>>, %arg10: memref<128x128xf32, #tpu.memory_space<vmem>>, %arg11: memref<1x128xf32, #tpu.memory_space<vmem>>, %arg12: memref<2x128xf32, #tpu.memory_space<vmem>>) attributes {dimension_semantics = [#tpu.dimension_semantics<parallel>], iteration_bounds = array<i64: 1>, scalar_prefetch = 0 : i64, scratch_operands = 0 : i64, tpu.core_type = #tpu.core_type<tc>, window_params = [{transform_indices = @transform_0, window_bounds = array<i64: 12, 12>}, {pipeline_mode = #tpu.pipeline_mode<synchronous>, transform_indices = @transform_1, window_bounds = array<i64: 12, 4>}, {transform_indices = @transform_2, window_bounds = array<i64: 12, 4>}, {transform_indices = @transform_3, window_bounds = array<i64: 12, 1>}, {pipeline_mode = #tpu.pipeline_mode<synchronous>, transform_indices = @transform_4, window_bounds = array<i64: 2, 12>}, {pipeline_mode = #tpu.pipeline_mode<synchronous>, transform_indices = @transform_5, window_bounds = array<i64: 1, 4>}, {pipeline_mode = #tpu.pipeline_mode<synchronous>, transform_indices = @transform_6, window_bounds = array<i64: 4, 128>}, {pipeline_mode = #tpu.pipeline_mode<synchronous>, transform_indices = @transform_7, window_bounds = array<i64: 1, 128>}, {pipeline_mode = #tpu.pipeline_mode<synchronous>, transform_indices = @transform_8, window_bounds = array<i64: 1, 128>}, {pipeline_mode = #tpu.pipeline_mode<synchronous>, transform_indices = @transform_9, window_bounds = array<i64: 128, 128>}, {pipeline_mode = #tpu.pipeline_mode<synchronous>, transform_indices = @transform_10, window_bounds = array<i64: 1, 128>}, {transform_indices = @transform_11, window_bounds = array<i64: 2, 128>}]} {
    %c0 = arith.constant 0 : index
    %c0_0 = arith.constant 0 : index
    %0 = vector.load %arg1[%c0, %c0_0] : memref<12x12xf32, #tpu.memory_space<vmem>>, vector<12x12xf32>
    %c0_1 = arith.constant 0 : index
    %c0_2 = arith.constant 0 : index
    %1 = vector.load %arg2[%c0_1, %c0_2] : memref<12x4xf32, #tpu.memory_space<vmem>>, vector<12x4xf32>
    %cst = arith.constant dense<0.000000e+00> : vector<12x4xf32>
    %2 = tpu.matmul %0, %1, %cst {dimension_numbers = #tpu.dot_dimension_numbers<[1], [0], [0], [1], [0, 0, 1, 1], [], []>} : vector<12x12xf32>, vector<12x4xf32>, vector<12x4xf32> -> vector<12x4xf32>
    %c0_3 = arith.constant 0 : index
    %c0_4 = arith.constant 0 : index
    %3 = vector.load %arg6[%c0_3, %c0_4] : memref<1x4xf32, #tpu.memory_space<vmem>>, vector<1x4xf32>
    %4 = vector.broadcast %3 : vector<1x4xf32> to vector<12x4xf32>
    %5 = arith.addf %2, %4 : vector<12x4xf32>
    %cst_5 = arith.constant 0.000000e+00 : f32
    %6 = vector.broadcast %cst_5 : f32 to vector<12x4xf32>
    %7 = arith.maximumf %5, %6 : vector<12x4xf32>
    %c0_6 = arith.constant 0 : index
    %c0_7 = arith.constant 0 : index
    %8 = vector.load %arg3[%c0_6, %c0_7] : memref<12x4xf32, #tpu.memory_space<vmem>>, vector<12x4xf32>
    %9 = arith.addf %7, %8 : vector<12x4xf32>
    %c0_8 = arith.constant 0 : index
    %c0_9 = arith.constant 0 : index
    %10 = vector.load %arg7[%c0_8, %c0_9] : memref<4x128xf32, #tpu.memory_space<vmem>>, vector<4x128xf32>
    %cst_10 = arith.constant dense<0.000000e+00> : vector<12x128xf32>
    %11 = tpu.matmul %9, %10, %cst_10 {dimension_numbers = #tpu.dot_dimension_numbers<[1], [0], [0], [1], [0, 0, 1, 1], [], []>} : vector<12x4xf32>, vector<4x128xf32>, vector<12x128xf32> -> vector<12x128xf32>
    %c0_11 = arith.constant 0 : index
    %c0_12 = arith.constant 0 : index
    %12 = vector.load %arg4[%c0_11, %c0_12] : memref<12x1xf32, #tpu.memory_space<vmem>>, vector<12x1xf32>
    %c0_13 = arith.constant 0 : index
    %c0_14 = arith.constant 0 : index
    %13 = vector.load %arg8[%c0_13, %c0_14] : memref<1x128xf32, #tpu.memory_space<vmem>>, vector<1x128xf32>
    %14 = vector.broadcast %12 : vector<12x1xf32> to vector<12x128xf32>
    %15 = vector.broadcast %13 : vector<1x128xf32> to vector<12x128xf32>
    %16 = arith.mulf %14, %15 : vector<12x128xf32>
    %17 = arith.addf %11, %16 : vector<12x128xf32>
    %c0_15 = arith.constant 0 : index
    %c0_16 = arith.constant 0 : index
    %18 = vector.load %arg9[%c0_15, %c0_16] : memref<1x128xf32, #tpu.memory_space<vmem>>, vector<1x128xf32>
    %19 = vector.broadcast %18 : vector<1x128xf32> to vector<12x128xf32>
    %20 = arith.addf %17, %19 : vector<12x128xf32>
    %cst_17 = arith.constant 0.000000e+00 : f32
    %21 = vector.broadcast %cst_17 : f32 to vector<12x128xf32>
    %22 = arith.maximumf %20, %21 : vector<12x128xf32>
    %c0_18 = arith.constant 0 : index
    %c0_19 = arith.constant 0 : index
    %23 = vector.load %arg10[%c0_18, %c0_19] : memref<128x128xf32, #tpu.memory_space<vmem>>, vector<128x128xf32>
    %cst_20 = arith.constant dense<0.000000e+00> : vector<12x128xf32>
    %24 = tpu.matmul %22, %23, %cst_20 {dimension_numbers = #tpu.dot_dimension_numbers<[1], [0], [0], [1], [0, 0, 1, 1], [], []>} : vector<12x128xf32>, vector<128x128xf32>, vector<12x128xf32> -> vector<12x128xf32>
    %c0_21 = arith.constant 0 : index
    %c0_22 = arith.constant 0 : index
    %25 = vector.load %arg11[%c0_21, %c0_22] : memref<1x128xf32, #tpu.memory_space<vmem>>, vector<1x128xf32>
    %26 = vector.broadcast %25 : vector<1x128xf32> to vector<12x128xf32>
    %27 = arith.addf %24, %26 : vector<12x128xf32>
    %cst_23 = arith.constant 0.000000e+00 : f32
    %28 = vector.broadcast %cst_23 : f32 to vector<12x128xf32>
    %29 = arith.maximumf %27, %28 : vector<12x128xf32>
    %c0_24 = arith.constant 0 : index
    %c0_25 = arith.constant 0 : index
    %30 = vector.load %arg5[%c0_24, %c0_25] : memref<2x12xf32, #tpu.memory_space<vmem>>, vector<2x12xf32>
    %cst_26 = arith.constant dense<0.000000e+00> : vector<2x128xf32>
    %31 = tpu.matmul %30, %29, %cst_26 {dimension_numbers = #tpu.dot_dimension_numbers<[1], [0], [0], [1], [0, 0, 1, 1], [], []>} : vector<2x12xf32>, vector<12x128xf32>, vector<2x128xf32> -> vector<2x128xf32>
    %c0_27 = arith.constant 0 : index
    %c0_28 = arith.constant 0 : index
    %32 = vector.load %arg12[%c0_27, %c0_28] : memref<2x128xf32, #tpu.memory_space<vmem>>, vector<2x128xf32>
    tpu.vector_store %arg12[%c0_27, %c0_28], %31 {strides = array<i32>} : memref<2x128xf32, #tpu.memory_space<vmem>>, vector<2x128xf32>,
    return
  }
  func.func @transform_0(%arg0: i32) -> (i32, i32) {
    %c0_i32 = arith.constant 0 : i32
    %c0_i32_0 = arith.constant 0 : i32
    return %arg0, %c0_i32 : i32, i32
  }
  func.func @transform_1(%arg0: i32) -> (i32, i32) {
    %c0_i32 = arith.constant 0 : i32
    %c0_i32_0 = arith.constant 0 : i32
    %c0_i32_1 = arith.constant 0 : i32
    return %c0_i32, %c0_i32_0 : i32, i32
  }
  func.func @transform_2(%arg0: i32) -> (i32, i32) {
    %c0_i32 = arith.constant 0 : i32
    %c0_i32_0 = arith.constant 0 : i32
    return %arg0, %c0_i32 : i32, i32
  }
  func.func @transform_3(%arg0: i32) -> (i32, i32) {
    %c0_i32 = arith.constant 0 : i32
    %c0_i32_0 = arith.constant 0 : i32
    return %arg0, %c0_i32 : i32, i32
  }
  func.func @transform_4(%arg0: i32) -> (i32, i32) {
    %c0_i32 = arith.constant 0 : i32
    %c0_i32_0 = arith.constant 0 : i32
    %c0_i32_1 = arith.constant 0 : i32
    return %c0_i32, %c0_i32_0 : i32, i32
  }
  func.func @transform_5(%arg0: i32) -> (i32, i32) {
    %c0_i32 = arith.constant 0 : i32
    %c0_i32_0 = arith.constant 0 : i32
    %c0_i32_1 = arith.constant 0 : i32
    return %c0_i32, %c0_i32_0 : i32, i32
  }
  func.func @transform_6(%arg0: i32) -> (i32, i32) {
    %c0_i32 = arith.constant 0 : i32
    %c0_i32_0 = arith.constant 0 : i32
    %c0_i32_1 = arith.constant 0 : i32
    return %c0_i32, %c0_i32_0 : i32, i32
  }
  func.func @transform_7(%arg0: i32) -> (i32, i32) {
    %c0_i32 = arith.constant 0 : i32
    %c0_i32_0 = arith.constant 0 : i32
    %c0_i32_1 = arith.constant 0 : i32
    return %c0_i32, %c0_i32_0 : i32, i32
  }
  func.func @transform_8(%arg0: i32) -> (i32, i32) {
    %c0_i32 = arith.constant 0 : i32
    %c0_i32_0 = arith.constant 0 : i32
    %c0_i32_1 = arith.constant 0 : i32
    return %c0_i32, %c0_i32_0 : i32, i32
  }
  func.func @transform_9(%arg0: i32) -> (i32, i32) {
    %c0_i32 = arith.constant 0 : i32
    %c0_i32_0 = arith.constant 0 : i32
    %c0_i32_1 = arith.constant 0 : i32
    return %c0_i32, %c0_i32_0 : i32, i32
  }
  func.func @transform_10(%arg0: i32) -> (i32, i32) {
    %c0_i32 = arith.constant 0 : i32
    %c0_i32_0 = arith.constant 0 : i32
    %c0_i32_1 = arith.constant 0 : i32
    return %c0_i32, %c0_i32_0 : i32, i32
  }
  func.func @transform_11(%arg0: i32) -> (i32, i32) {
    %c0_i32 = arith.constant 0 : i32
    %c0_i32_0 = arith.constant 0 : i32
    return %arg0, %c0_i32 : i32, i32
  }
}

</mosaic_0001>

<bundles_post_ra>
// kernel: gnn_critic_forward.1
= control target key start
LH: loop header
LB: loop body
LE: loop exit
PB: predicated region body
PF: predicated region fallthrough
CT: control target
= control target key end

     0   :  { %16 = vsyncpa [#allocation3], 0  ;;  %s579_s17 = smov [#allocation2]   ;;  %s701_s0 = inlined_call_operand.vmem [shape: f32[12,12], index: 0, kind: input, shape index: {}]   ;;  %s702_s1 = inlined_call_operand.vmem [shape: f32[12,4], index: 1, kind: input, shape index: {}]   ;;  %s703_s2 = inlined_call_operand.vmem [shape: f32[12,4], index: 2, kind: input, shape index: {}]   ;;  %s704_s3 = inlined_call_operand.vmem [shape: f32[12,1], index: 3, kind: input, shape index: {}]   ;;  %s705_s4 = inlined_call_operand.vmem [shape: f32[2,12], index: 4, kind: input, shape index: {}]   ;;  %s706_s5 = inlined_call_operand.vmem [shape: f32[1,4], index: 5, kind: input, shape index: {}]   ;;  %s707_s6 = inlined_call_operand.vmem [shape: f32[4,128], index: 6, kind: input, shape index: {}]   ;;  %s708_s7 = inlined_call_operand.vmem [shape: f32[1,128], index: 7, kind: input, shape index: {}]   ;;  %s709_s8 = inlined_call_operand.vmem [shape: f32[1,128], index: 8, kind: input, shape index: {}]   ;;  %s710_s9 = inlined_call_operand.hbm [shape: f32[128,128], index: 9, kind: input, shape index: {}]   ;;  %s711_s10 = inlined_call_operand.vmem [shape: f32[1,128], index: 10, kind: input, shape index: {}]   ;;  %s712_s11 = inlined_call_operand.vmem [shape: f32[2,128], index: 11, kind: output, shape index: {}]  }
   0x1   :  { %s40_s18 = sshll.u32 %s579_s17, 4  ;;  %s41_s18 = int_to_ptr.vmem [resolvable:$true] %s40_s18 }
   0x2   :  { %s565_s19 = scalar_lea.vmem %s41_s18, 2048  ;;  %p570_p1 = scmp.lt.s32.totalorder %s41_s18, %s41_s18 }
   0x3   :  { %p566_p0 = scmp.ne.s32.totalorder %s41_s18, %s565_s19  ;;  %p571_p2 = scmp.lt.s32.totalorder %s565_s19, %s565_s19 }
   0x5   :  { %p572_p3 = por %p571_p2, %p570_p1 }
   0x7   :  { %p573_p4 = pnand %p572_p3, %p566_p0 }
   0x9   :  { %576 = shalt.err (!%p573_p4)
}
   0xa   :  { %s580_s20 = smov 128   ;;  %s581_s21 = smov 8  }
   0xb   :  { %46 = dma.hbm_to_vmem [thread:$0]  %s710_s9, 2048, %s41_s18, [#allocation3], %s580_s20, %s580_s20, %s581_s21  }
   0xc   :  { %577 = dma.done.wait [#allocation3], 2048  }
   0xd   :  { %578 = vsyncadd [#allocation3], 4294965248  ;;  %vm70_vm0 = vcmask 1043456   ;;  %vm63_vm1 = vcmask 97280   ;;  %v55_v0 = vld [vmem:[%s702_s1 + $0x8] sm:$0xf] }
   0xe   :  { %v54_v1 = vld [vmem:[%s702_s1] sm:$0xff]  ;;  %496 = vmatprep.subr.msk.mxu0 %vm70_vm0, %v55_v0  ;;  %v53_v3 = vld [vmem:[%s701_s0 + $0x8] sm:$0xf]  ;;  %v288_v6 = vld [vmem:[#allocation2 + $0x78] sm:$0xff]  ;;  %v582_v7 = vmov 0   ;;  %vm177_vm2 = vcmask 31744  }
   0xf   :  { %v52_v2 = vld [vmem:[%s701_s0] sm:$0xff]  ;;  %497 = vmatpush3.msk.msra.mxu0 %vm70_vm0, %v55_v0  ;;  %556 = vset.pattern.permute.xlu0 %v582_v7  ;;  %v287_v8 = vld [vmem:[#allocation2 + $0x70] sm:$0xff]  ;;  %v286_v9 = vld [vmem:[#allocation2 + $0x68] sm:$0xff]  ;;  %v583_v49 = vmov 0.0   ;;  %vm584_vm3 = vmmov 0  }
  0x10   :  { %500 = vmatprep.mubr.msk.f32.mxu0 %vm63_vm1, %v52_v2  ;;  %498 = vmatprep.subr.mxu0 %v54_v1  ;;  %v155_v4 = vld [vmem:[%s707_s6] sm:$0xf]  ;;  %v157_v10 = vld [vmem:[%s704_s3 + $0x8] sm:$0xf]  ;;  %v284_v12 = vld [vmem:[#allocation2 + $0x58] sm:$0xff] }
  0x11   :  { %499 = vmatpush3.msra.mxu0 %v54_v1  ;;  %v156_v5 = vld [vmem:[%s704_s3] sm:$0xff]  ;;  %508 = vmatprep.subr.mxu1 %v288_v6  ;;  %v283_v13 = vld [vmem:[#allocation2 + $0x50] sm:$0xff]  ;;  %v282_v14 = vld [vmem:[#allocation2 + $0x48] sm:$0xff] }
  0x12   :  { %501 = vmatmul.mubr.msk.f32.vlgmr.msra.gmra.mxu0 %vm63_vm1, %v53_v3  ;;  %503 = vmatprep.subr.msk.mxu0 %vm70_vm0, %v155_v4  ;;  %v285_v11 = vld [vmem:[#allocation2 + $0x60] sm:$0xff]  ;;  %v280_v16 = vld [vmem:[#allocation2 + $0x38] sm:$0xff]  ;;  %v279_v17 = vld [vmem:[#allocation2 + $0x30] sm:$0xff] }
  0x13   :  { %504 = vmatpush3.msk.msra.mxu0 %vm70_vm0, %v155_v4  ;;  %161 = vperm.xlu0 %556, %v156_v5   ;;  %v281_v15 = vld [vmem:[#allocation2 + $0x40] sm:$0xff]  ;;  %v278_v18 = vld [vmem:[#allocation2 + $0x28] sm:$0xff]  ;;  %v276_v31 = vld [vmem:[#allocation2 + $0x18] sm:$0xff] }
  0x14   :  { %509 = vmatpush3.msra.mxu1 %v288_v6  ;;  %v456_v19 = vld [vmem:[%s706_s5] ss:$0 sm:$0xff]  ;;  %v152_v26 = vld [vmem:[%s703_s2 + $0x8] sm:$0xf]  ;;  %v275_v32 = vld [vmem:[#allocation2 + $0x10] sm:$0xff]  ;;  %543 = vmatprep.subr.mxu0 %v583_v49 }
  0x15   :  { %510 = vmatprep.subr.mxu1 %v287_v8  ;;  %v151_v25 = vld [vmem:[%s703_s2] sm:$0xff]  ;;  %v274_v33 = vld [vmem:[#allocation2 + $0x8] sm:$0xff] }
  0x16   :  { %511 = vmatpush3.msra.mxu1 %v287_v8  ;;  %v277_v30 = vld [vmem:[#allocation2 + $0x20] sm:$0xff] }
  0x17   :  { %512 = vmatprep.subr.mxu1 %v286_v9  ;;  %166 = vperm.xlu0 %556, %v157_v10   ;;  %v273_v34 = vld [vmem:[#allocation2] sm:$0xff] }
  0x18   :  { %513 = vmatpush3.msra.mxu1 %v286_v9  ;;  %v460_v36 = vld [vmem:[%s708_s7] ss:$0 sm:$0xff] }
  0x19   :  { %514 = vmatprep.subr.mxu1 %v285_v11  ;;  %v464_v42 = vld [vmem:[%s709_s8] ss:$0 sm:$0xff] }
  0x1a   :  { %515 = vmatpush3.msra.mxu1 %v285_v11  ;;  %v465_v50 = vld [vmem:[%s711_s10] ss:$0 sm:$0xff] }
  0x1b   :  { %516 = vmatprep.subr.mxu1 %v284_v12  ;;  %v373_v57 = vld [vmem:[%s705_s4] sm:$0x3] }
  0x1c   :  { %517 = vmatpush3.msra.mxu1 %v284_v12 }
  0x1d   :  { %518 = vmatprep.subr.mxu1 %v283_v13 }
  0x1e   :  { %519 = vmatpush3.msra.mxu1 %v283_v13 }
  0x1f   :  { %520 = vmatprep.subr.mxu1 %v282_v14 }
  0x20   :  { %521 = vmatpush3.msra.mxu1 %v282_v14 }
  0x21   :  { %522 = vmatprep.subr.mxu1 %v281_v15 }
  0x22   :  { %523 = vmatpush3.msra.mxu1 %v281_v15 }
  0x23   :  { %524 = vmatprep.subr.mxu1 %v280_v16 }
  0x24   :  { %525 = vmatpush3.msra.mxu1 %v280_v16 }
  0x25   :  { %526 = vmatprep.subr.mxu1 %v279_v17 }
  0x26   :  { %527 = vmatpush3.msra.mxu1 %v279_v17 }
  0x27   :  { %528 = vmatprep.subr.mxu1 %v278_v18 }
  0x28   :  { %529 = vmatpush3.msra.mxu1 %v278_v18 }
  0x29   :  { %530 = vmatprep.subr.mxu1 %v277_v30 }
  0x2a   :  { %531 = vmatpush3.msra.mxu1 %v277_v30 }
  0x2b   :  { %532 = vmatprep.subr.mxu1 %v276_v31 }
  0x2c   :  { %533 = vmatpush3.msra.mxu1 %v276_v31 }
  0x2d   :  { %534 = vmatprep.subr.mxu1 %v275_v32 }
  0x2e   :  { %535 = vmatpush3.msra.mxu1 %v275_v32 }
  0x2f   :  { %536 = vmatprep.subr.mxu1 %v274_v33 }
  0x30   :  { %537 = vmatpush3.msra.mxu1 %v274_v33 }
  0x31   :  { %538 = vmatprep.subr.mxu1 %v273_v34 }
  0x32   :  { %539 = vmatpush3.msra.mxu1 %v273_v34 }
  0x8e   :  { %v162_v35 = vpop.permute.xlu0 %161 }
  0x8f   :  { %v175_v40 = vmul.f32 %v460_v36, %v162_v35 }
  0x92   :  { %v167_v37 = vpop.permute.xlu0 %166 }
  0x93   :  { %v176_v38 = vmul.f32 %v460_v36, %v167_v37 }
  0xd2   :  { %v502_v20 = vpop.f32.mrf.mxu0 }
  0xd3   :  { %v146_v21 = vadd.f32 %v502_v20, %v456_v19 }
  0xd4   :  { %v140_v22 = vpop.f32.mrf.mxu0 }
  0xd5   :  { %v141_v23 = vadd.f32 %v456_v19, %v140_v22  ;;  %v150_v24 = vmax.f32 %v146_v21, 0.0 }
  0xd7   :  { %v149_v27 = vmax.f32 %v141_v23, 0.0  ;;  %v154_v29 = vadd.f32 %v152_v26, %v150_v24 }
  0xd9   :  { %v153_v28 = vadd.f32 %v151_v25, %v149_v27 }
  0xdb   :  { %505 = vmatprep.mubr.msk.f32.mxu0 %vm177_vm2, %v153_v28 }
  0xdc   :  { %506 = vmatmul.mubr.msk.f32.vlgmr.msra.gmra.mxu0 %vm177_vm2, %v154_v29 }
  0xdd   :  { %547 = vmatprep.mubr.msk.f32.mxu0 %vm584_vm3, %v583_v49 }
 0x19c   :  { %v507_v39 = vpop.f32.mrf.mxu0 }
 0x19d   :  { %v259_v41 = vadd.f32 %v507_v39, %v176_v38 }
 0x19e   :  { %v253_v43 = vpop.f32.mrf.mxu0 }
 0x19f   :  { %v254_v44 = vadd.f32 %v253_v43, %v175_v40  ;;  %v270_v45 = vadd.f32 %v464_v42, %v259_v41 }
 0x1a1   :  { %v269_v46 = vadd.f32 %v464_v42, %v254_v44  ;;  %v272_v48 = vmax.f32 %v270_v45, 0.0 }
 0x1a3   :  { %v271_v47 = vmax.f32 %v269_v46, 0.0 }
 0x1a5   :  { %540 = vmatprep.mubr.f32.mxu1 %v271_v47 }
 0x1a6   :  { %541 = vmatmul.mubr.f32.vlgmr.msra.gmra.mxu1 %v272_v48 }
 0x266   :  { %v542_v51 = vpop.f32.mrf.mxu1 }
 0x267   :  { %v368_v52 = vadd.f32 %v542_v51, %v465_v50 }
 0x268   :  { %v362_v53 = vpop.f32.mrf.mxu1 }
 0x269   :  { %v372_v54 = vmax.f32 %v368_v52, 0.0  ;;  %v363_v55 = vadd.f32 %v465_v50, %v362_v53 }
 0x26b   :  { %v371_v56 = vmax.f32 %v363_v55, 0.0  ;;  %544 = vmatpush3.msk.msra.mxu0 %vm70_vm0, %v372_v54 }
 0x26c   :  { %545 = vmatprep.subr.mxu0 %v583_v49 }
 0x26d   :  { %546 = vmatpush3.msra.mxu0 %v371_v56 }
 0x26e   :  { %548 = vmatmul.mubr.msk.f32.vlgmr.msra.gmra.mxu0 %vm63_vm1, %v373_v57 }
 0x32e   :  { %v446_v58 = vpop.f32.mrf.mxu0 }
 0x32f   :  { %450 = vst [vmem:[%s712_s11] sm:$0x3] %v446_v58 }
 0x330   :  { %v549_v59 = vpop.f32.mrf.mxu0 }
 0x331   :  { %455 = vsyncpa [#allocation3], 1 }

</bundles_post_ra>
